<compile_context>
chip_gen: v6e
topology: v6e:2x2x1
jax: 0.10.0
libtpu: 0.0.40
codegen_flags: <defaults>
</compile_context>

<pallas_src>
import functools

import jax
import jax.numpy as jnp
from jax.experimental import pallas as pl
from jax.experimental.pallas import tpu as pltpu


def _round_up(x, m):
    return (x + m - 1) // m * m


def _conv_in_relu_kernel(x_ref, w_ref, b_ref, m_ref, o_ref, *,
                         tap_offsets, c_in, pw, n_valid, eps, needs_mask):
    """Fused conv (K*K shifted matmuls) + bias + InstanceNorm(affine=False) + ReLU.

    x_ref: (rows, L)        input slab (compute dtype).  stride=1: flat padded
                            image (rows == C_in), each tap = lane-shifted window;
                            stride>1 fallback: rows == K*K*C_in, each tap = row block.
    w_ref: (K*K, TC, C_in)  per-tap weight slices (compute dtype).
    b_ref: (TC, 1)          f32 conv bias.
    m_ref: (1, Pw)          f32 validity mask over flattened output positions.
    o_ref: (TC, Pw)         output tile, spatial on lanes (Pw multiple of 128).
    """
    acc = None
    for t, (r0, c0) in enumerate(tap_offsets):
        win = x_ref[r0:r0 + c_in, c0:c0 + pw]            # (C_in, Pw) static slice
        w_tap = w_ref[t]                                 # (TC, C_in)
        part = jnp.dot(w_tap, win, preferred_element_type=jnp.float32)
        acc = part if acc is None else acc + part        # (TC, Pw) f32

    conv = acc + b_ref[...]                              # bias bcast over lanes

    # InstanceNorm2d(affine=False): per-channel stats over valid spatial
    # positions only (overscan + lane-padding columns masked out), all in f32.
    inv_n = 1.0 / float(n_valid)
    if needs_mask:
        m = m_ref[...]                                   # (1, Pw)
        mean = jnp.sum(conv * m, axis=1, keepdims=True) * inv_n      # (TC, 1)
        diff = (conv - mean) * m
    else:
        mean = jnp.sum(conv, axis=1, keepdims=True) * inv_n
        diff = conv - mean
    var = jnp.sum(diff * diff, axis=1, keepdims=True) * inv_n        # (TC, 1)
    normed = (conv - mean) * jax.lax.rsqrt(var + eps)

    o_ref[...] = jnp.maximum(normed, 0.0).astype(o_ref.dtype)


def _pick_cout_tile(c_out, max_tile=64):
    """Output-channel tile: full C_out when small, else a multiple-of-8 divisor."""
    if c_out <= max_tile:
        return c_out
    for t in range(max_tile, 7, -8):
        if c_out % t == 0:
            return t
    return c_out


def conv_layer_forward(x, weight, bias, *, kernel_size, stride=1, dilation=1,
                       eps=1e-5, compute_dtype=jnp.bfloat16):
    """ConvLayer forward (norm='in', nonlinear='relu', groups=1).

    x:      (N, C_in, H, W)   float32, NCHW
    weight: (C_out, C_in, K, K)
    bias:   (C_out,)
    returns (N, C_out, H_out, W_out)
    """
    N, C_in, H, W = x.shape
    C_out = weight.shape[0]
    k = kernel_size
    d = dilation

    # ReflectionPad2d, pad = (k + (d-1)*(k-1)) // 2
    pad = (k + (d - 1) * (k - 1)) // 2
    x_pad = jnp.pad(x, ((0, 0), (0, 0), (pad, pad), (pad, pad)), mode="reflect")
    Hp, Wp = H + 2 * pad, W + 2 * pad
    Ho = (Hp - d * (k - 1) - 1) // stride + 1
    Wo = (Wp - d * (k - 1) - 1) // stride + 1

    if stride == 1:
        # Row-overscan layout: flat padded image; the tap-(kh,kw) window is the
        # contiguous lane slice starting at d*(kh*Wp + kw).  Positions p with
        # (p % Wp) >= Wo (or p >= Ho*Wp, the lane padding) are masked / cropped.
        Pw = Ho * Wp
        Pw_pad = _round_up(Pw, 128)                      # lane-dense stores
        max_off = d * (k - 1) * (Wp + 1)                 # largest tap offset
        L = _round_up(max(Hp * Wp, max_off + Pw_pad), 128)
        x_in = x_pad.reshape(N, C_in, Hp * Wp)
        if L > Hp * Wp:
            x_in = jnp.pad(x_in, ((0, 0), (0, 0), (0, L - Hp * Wp)))
        tap_offsets = tuple((0, d * (kh * Wp + kw))
                            for kh in range(k) for kw in range(k))
        rows = C_in
        needs_mask = (Wo != Wp) or (Pw_pad != Pw)
        if needs_mask:
            pos = jnp.arange(Pw_pad, dtype=jnp.int32)
            valid = ((pos % Wp) < Wo) & (pos < Pw)
            mask = valid.astype(jnp.float32).reshape(1, Pw_pad)
        else:
            mask = jnp.ones((1, Pw_pad), jnp.float32)
        n_valid = Ho * Wo
    else:
        # TODO(synk): stride>1 falls back to materialized per-tap slices
        # (K^2/stride^2 input inflation); an in-kernel strided gather would avoid it.
        Pw = Ho * Wo
        Pw_pad = _round_up(Pw, 128)
        views = []
        for kh in range(k):
            for kw in range(k):
                v = x_pad[:, :,
                          kh * d: kh * d + (Ho - 1) * stride + 1: stride,
                          kw * d: kw * d + (Wo - 1) * stride + 1: stride]
                views.append(v.reshape(N, C_in, Pw))
        x_in = jnp.concatenate(views, axis=1)            # (N, K*K*C_in, Pw)
        if Pw_pad > Pw:
            x_in = jnp.pad(x_in, ((0, 0), (0, 0), (0, Pw_pad - Pw)))
        L = Pw_pad
        tap_offsets = tuple((t * C_in, 0) for t in range(k * k))
        rows = k * k * C_in
        needs_mask = Pw_pad != Pw
        if needs_mask:
            pos = jnp.arange(Pw_pad, dtype=jnp.int32)
            mask = (pos < Pw).astype(jnp.float32).reshape(1, Pw_pad)
        else:
            mask = jnp.ones((1, Pw_pad), jnp.float32)
        n_valid = Pw

    x_in = x_in.astype(compute_dtype)

    # Per-tap weight slices: (C_out, C_in, K, K) -> (K*K, C_out, C_in), tap = kh*K+kw.
    w_taps = jnp.transpose(weight, (2, 3, 0, 1)).reshape(k * k, C_out, C_in)
    w_taps = w_taps.astype(compute_dtype)
    b_col = bias.reshape(C_out, 1).astype(jnp.float32)

    tc = _pick_cout_tile(C_out)
    n_ct = C_out // tc
    out_dtype = x.dtype

    kernel = functools.partial(
        _conv_in_relu_kernel,
        tap_offsets=tap_offsets, c_in=C_in, pw=Pw_pad, n_valid=n_valid,
        eps=eps, needs_mask=needs_mask)

    cost = pl.CostEstimate(
        flops=2 * N * C_out * C_in * k * k * Ho * Wo,
        transcendentals=N * C_out,
        bytes_accessed=(x_in.size * x_in.dtype.itemsize
                        + w_taps.size * w_taps.dtype.itemsize
                        + b_col.size * 4 + mask.size * 4
                        + N * C_out * Pw_pad * jnp.dtype(out_dtype).itemsize))

    out_flat = pl.pallas_call(
        kernel,
        out_shape=jax.ShapeDtypeStruct((N, C_out, Pw_pad), out_dtype),
        grid_spec=pltpu.PrefetchScalarGridSpec(
            num_scalar_prefetch=0,
            grid=(N, n_ct),
            in_specs=[
                pl.BlockSpec((None, rows, L), lambda n, c: (n, 0, 0)),
                pl.BlockSpec((k * k, tc, C_in), lambda n, c: (0, c, 0)),
                pl.BlockSpec((tc, 1), lambda n, c: (c, 0)),
                pl.BlockSpec((1, Pw_pad), lambda n, c: (0, 0)),
            ],
            out_specs=pl.BlockSpec((None, tc, Pw_pad), lambda n, c: (n, c, 0)),
        ),
        compiler_params=pltpu.CompilerParams(
            dimension_semantics=("parallel", "parallel"),
            vmem_limit_bytes=64 * 1024 * 1024),
        cost_estimate=cost,
    )(x_in, w_taps, b_col, mask)

    if stride == 1:
        # Drop lane padding + overscan columns (single wrapper-side crop pass).
        out = out_flat[:, :, :Ho * Wp].reshape(N, C_out, Ho, Wp)[:, :, :, :Wo]
    else:
        out = out_flat[:, :, :Ho * Wo].reshape(N, C_out, Ho, Wo)
    return out


def _reference(x, weight, bias, *, kernel_size, stride=1, dilation=1, eps=1e-5):
    pad = (kernel_size + (dilation - 1) * (kernel_size - 1)) // 2
    x_pad = jnp.pad(x, ((0, 0), (0, 0), (pad, pad), (pad, pad)), mode="reflect")
    out = jax.lax.conv_general_dilated(
        x_pad, weight,
        window_strides=(stride, stride),
        padding="VALID",
        rhs_dilation=(dilation, dilation),
        dimension_numbers=("NCHW", "OIHW", "NCHW"),
    ) + bias.reshape(1, -1, 1, 1)
    mean = jnp.mean(out, axis=(2, 3), keepdims=True)
    var = jnp.mean((out - mean) ** 2, axis=(2, 3), keepdims=True)
    out = (out - mean) * jax.lax.rsqrt(var + eps)
    return jnp.maximum(out, 0.0)


if __name__ == "__main__":
    # Shapes consistent with ConvLayer(4, 8, kernel_size=3, stride=1).
    N, C_in, H, W = 2, 4, 16, 16
    C_out, K = 8, 3

    key = jax.random.PRNGKey(0)
    kx, kw, kb = jax.random.split(key, 3)
    x = jax.random.normal(kx, (N, C_in, H, W), dtype=jnp.float32)
    fan_in = C_in * K * K
    weight = jax.random.normal(kw, (C_out, C_in, K, K), dtype=jnp.float32) / jnp.sqrt(fan_in)
    bias = jax.random.normal(kb, (C_out,), dtype=jnp.float32) * 0.1

    out = jax.block_until_ready(
        conv_layer_forward(x, weight, bias, kernel_size=K, stride=1, dilation=1))
    assert out.shape == (N, C_out, H, W), out.shape

    # Tight check: reference whose conv also sees bf16-rounded operands
    # (isolates kernel structure from bf16 input rounding).
    ref_bf16 = jax.block_until_ready(_reference(
        x.astype(jnp.bfloat16).astype(jnp.float32),
        weight.astype(jnp.bfloat16).astype(jnp.float32),
        bias, kernel_size=K, stride=1, dilation=1))
    assert jnp.allclose(out, ref_bf16, atol=2e-3, rtol=2e-3), \
        float(jnp.max(jnp.abs(out - ref_bf16)))

    # Sanity check against the full-f32 reference (loose tolerance because the
    # kernel's matmul operands are bf16 by design).
    ref_f32 = jax.block_until_ready(
        _reference(x, weight, bias, kernel_size=K, stride=1, dilation=1))
    assert jnp.allclose(out, ref_f32, atol=1e-1, rtol=1e-1), \
        float(jnp.max(jnp.abs(out - ref_f32)))

    print("KERNEL_OK")
</pallas_src>

<mosaic_0001>
module attributes {stable_mosaic.version = 11 : i64} {
  func.func @_conv_in_relu_kernel(%arg0: i32, %arg1: i32, %arg2: memref<1x4x512xbf16, #tpu.memory_space<vmem>>, %arg3: memref<9x8x4xbf16, #tpu.memory_space<vmem>>, %arg4: memref<8x1xf32, #tpu.memory_space<vmem>>, %arg5: memref<1x384xf32, #tpu.memory_space<vmem>>, %arg6: memref<1x8x384xf32, #tpu.memory_space<vmem>>) attributes {dimension_semantics = [#tpu.dimension_semantics<parallel>, #tpu.dimension_semantics<parallel>], iteration_bounds = array<i64: 2, 1>, scalar_prefetch = 0 : i64, scratch_operands = 0 : i64, tpu.core_type = #tpu.core_type<tc>, window_params = [{transform_indices = @transform_0, window_bounds = array<i64: 1, 4, 512>}, {transform_indices = @transform_1, window_bounds = array<i64: 9, 8, 4>}, {transform_indices = @transform_2, window_bounds = array<i64: 8, 1>}, {pipeline_mode = #tpu.pipeline_mode<synchronous>, transform_indices = @transform_3, window_bounds = array<i64: 1, 384>}, {transform_indices = @transform_4, window_bounds = array<i64: 1, 8, 384>}]} {
    %c0 = arith.constant 0 : index
    %c0_0 = arith.constant 0 : index
    %c0_1 = arith.constant 0 : index
    %0 = vector.load %arg2[%c0, %c0_0, %c0_1] : memref<1x4x512xbf16, #tpu.memory_space<vmem>>, vector<1x4x384xbf16>
    %1 = vector.shape_cast %0 : vector<1x4x384xbf16> to vector<4x384xbf16>
    %c0_2 = arith.constant 0 : index
    %c0_3 = arith.constant 0 : index
    %c0_4 = arith.constant 0 : index
    %2 = vector.load %arg3[%c0_2, %c0_3, %c0_4] : memref<9x8x4xbf16, #tpu.memory_space<vmem>>, vector<1x8x4xbf16>
    %3 = vector.shape_cast %2 : vector<1x8x4xbf16> to vector<8x4xbf16>
    %cst = arith.constant dense<0.000000e+00> : vector<8x384xf32>
    %4 = tpu.matmul %3, %1, %cst {dimension_numbers = #tpu.dot_dimension_numbers<[1], [0], [0], [1], [0, 0, 1, 1], [], []>} : vector<8x4xbf16>, vector<4x384xbf16>, vector<8x384xf32> -> vector<8x384xf32>
    %c0_5 = arith.constant 0 : index
    %c0_6 = arith.constant 0 : index
    %c1 = arith.constant 1 : index
    %5 = vector.load %arg2[%c0_5, %c0_6, %c1] : memref<1x4x512xbf16, #tpu.memory_space<vmem>>, vector<1x4x384xbf16>
    %6 = vector.shape_cast %5 : vector<1x4x384xbf16> to vector<4x384xbf16>
    %c1_7 = arith.constant 1 : index
    %c0_8 = arith.constant 0 : index
    %c0_9 = arith.constant 0 : index
    %7 = vector.load %arg3[%c1_7, %c0_8, %c0_9] : memref<9x8x4xbf16, #tpu.memory_space<vmem>>, vector<1x8x4xbf16>
    %8 = vector.shape_cast %7 : vector<1x8x4xbf16> to vector<8x4xbf16>
    %cst_10 = arith.constant dense<0.000000e+00> : vector<8x384xf32>
    %9 = tpu.matmul %8, %6, %cst_10 {dimension_numbers = #tpu.dot_dimension_numbers<[1], [0], [0], [1], [0, 0, 1, 1], [], []>} : vector<8x4xbf16>, vector<4x384xbf16>, vector<8x384xf32> -> vector<8x384xf32>
    %10 = arith.addf %4, %9 : vector<8x384xf32>
    %c0_11 = arith.constant 0 : index
    %c0_12 = arith.constant 0 : index
    %c2 = arith.constant 2 : index
    %11 = vector.load %arg2[%c0_11, %c0_12, %c2] : memref<1x4x512xbf16, #tpu.memory_space<vmem>>, vector<1x4x384xbf16>
    %12 = vector.shape_cast %11 : vector<1x4x384xbf16> to vector<4x384xbf16>
    %c2_13 = arith.constant 2 : index
    %c0_14 = arith.constant 0 : index
    %c0_15 = arith.constant 0 : index
    %13 = vector.load %arg3[%c2_13, %c0_14, %c0_15] : memref<9x8x4xbf16, #tpu.memory_space<vmem>>, vector<1x8x4xbf16>
    %14 = vector.shape_cast %13 : vector<1x8x4xbf16> to vector<8x4xbf16>
    %cst_16 = arith.constant dense<0.000000e+00> : vector<8x384xf32>
    %15 = tpu.matmul %14, %12, %cst_16 {dimension_numbers = #tpu.dot_dimension_numbers<[1], [0], [0], [1], [0, 0, 1, 1], [], []>} : vector<8x4xbf16>, vector<4x384xbf16>, vector<8x384xf32> -> vector<8x384xf32>
    %16 = arith.addf %10, %15 : vector<8x384xf32>
    %c0_17 = arith.constant 0 : index
    %c0_18 = arith.constant 0 : index
    %c18 = arith.constant 18 : index
    %17 = vector.load %arg2[%c0_17, %c0_18, %c18] : memref<1x4x512xbf16, #tpu.memory_space<vmem>>, vector<1x4x384xbf16>
    %18 = vector.shape_cast %17 : vector<1x4x384xbf16> to vector<4x384xbf16>
    %c3 = arith.constant 3 : index
    %c0_19 = arith.constant 0 : index
    %c0_20 = arith.constant 0 : index
    %19 = vector.load %arg3[%c3, %c0_19, %c0_20] : memref<9x8x4xbf16, #tpu.memory_space<vmem>>, vector<1x8x4xbf16>
    %20 = vector.shape_cast %19 : vector<1x8x4xbf16> to vector<8x4xbf16>
    %cst_21 = arith.constant dense<0.000000e+00> : vector<8x384xf32>
    %21 = tpu.matmul %20, %18, %cst_21 {dimension_numbers = #tpu.dot_dimension_numbers<[1], [0], [0], [1], [0, 0, 1, 1], [], []>} : vector<8x4xbf16>, vector<4x384xbf16>, vector<8x384xf32> -> vector<8x384xf32>
    %22 = arith.addf %16, %21 : vector<8x384xf32>
    %c0_22 = arith.constant 0 : index
    %c0_23 = arith.constant 0 : index
    %c19 = arith.constant 19 : index
    %23 = vector.load %arg2[%c0_22, %c0_23, %c19] : memref<1x4x512xbf16, #tpu.memory_space<vmem>>, vector<1x4x384xbf16>
    %24 = vector.shape_cast %23 : vector<1x4x384xbf16> to vector<4x384xbf16>
    %c4 = arith.constant 4 : index
    %c0_24 = arith.constant 0 : index
    %c0_25 = arith.constant 0 : index
    %25 = vector.load %arg3[%c4, %c0_24, %c0_25] : memref<9x8x4xbf16, #tpu.memory_space<vmem>>, vector<1x8x4xbf16>
    %26 = vector.shape_cast %25 : vector<1x8x4xbf16> to vector<8x4xbf16>
    %cst_26 = arith.constant dense<0.000000e+00> : vector<8x384xf32>
    %27 = tpu.matmul %26, %24, %cst_26 {dimension_numbers = #tpu.dot_dimension_numbers<[1], [0], [0], [1], [0, 0, 1, 1], [], []>} : vector<8x4xbf16>, vector<4x384xbf16>, vector<8x384xf32> -> vector<8x384xf32>
    %28 = arith.addf %22, %27 : vector<8x384xf32>
    %c0_27 = arith.constant 0 : index
    %c0_28 = arith.constant 0 : index
    %c20 = arith.constant 20 : index
    %29 = vector.load %arg2[%c0_27, %c0_28, %c20] : memref<1x4x512xbf16, #tpu.memory_space<vmem>>, vector<1x4x384xbf16>
    %30 = vector.shape_cast %29 : vector<1x4x384xbf16> to vector<4x384xbf16>
    %c5 = arith.constant 5 : index
    %c0_29 = arith.constant 0 : index
    %c0_30 = arith.constant 0 : index
    %31 = vector.load %arg3[%c5, %c0_29, %c0_30] : memref<9x8x4xbf16, #tpu.memory_space<vmem>>, vector<1x8x4xbf16>
    %32 = vector.shape_cast %31 : vector<1x8x4xbf16> to vector<8x4xbf16>
    %cst_31 = arith.constant dense<0.000000e+00> : vector<8x384xf32>
    %33 = tpu.matmul %32, %30, %cst_31 {dimension_numbers = #tpu.dot_dimension_numbers<[1], [0], [0], [1], [0, 0, 1, 1], [], []>} : vector<8x4xbf16>, vector<4x384xbf16>, vector<8x384xf32> -> vector<8x384xf32>
    %34 = arith.addf %28, %33 : vector<8x384xf32>
    %c0_32 = arith.constant 0 : index
    %c0_33 = arith.constant 0 : index
    %c36 = arith.constant 36 : index
    %35 = vector.load %arg2[%c0_32, %c0_33, %c36] : memref<1x4x512xbf16, #tpu.memory_space<vmem>>, vector<1x4x384xbf16>
    %36 = vector.shape_cast %35 : vector<1x4x384xbf16> to vector<4x384xbf16>
    %c6 = arith.constant 6 : index
    %c0_34 = arith.constant 0 : index
    %c0_35 = arith.constant 0 : index
    %37 = vector.load %arg3[%c6, %c0_34, %c0_35] : memref<9x8x4xbf16, #tpu.memory_space<vmem>>, vector<1x8x4xbf16>
    %38 = vector.shape_cast %37 : vector<1x8x4xbf16> to vector<8x4xbf16>
    %cst_36 = arith.constant dense<0.000000e+00> : vector<8x384xf32>
    %39 = tpu.matmul %38, %36, %cst_36 {dimension_numbers = #tpu.dot_dimension_numbers<[1], [0], [0], [1], [0, 0, 1, 1], [], []>} : vector<8x4xbf16>, vector<4x384xbf16>, vector<8x384xf32> -> vector<8x384xf32>
    %40 = arith.addf %34, %39 : vector<8x384xf32>
    %c0_37 = arith.constant 0 : index
    %c0_38 = arith.constant 0 : index
    %c37 = arith.constant 37 : index
    %41 = vector.load %arg2[%c0_37, %c0_38, %c37] : memref<1x4x512xbf16, #tpu.memory_space<vmem>>, vector<1x4x384xbf16>
    %42 = vector.shape_cast %41 : vector<1x4x384xbf16> to vector<4x384xbf16>
    %c7 = arith.constant 7 : index
    %c0_39 = arith.constant 0 : index
    %c0_40 = arith.constant 0 : index
    %43 = vector.load %arg3[%c7, %c0_39, %c0_40] : memref<9x8x4xbf16, #tpu.memory_space<vmem>>, vector<1x8x4xbf16>
    %44 = vector.shape_cast %43 : vector<1x8x4xbf16> to vector<8x4xbf16>
    %cst_41 = arith.constant dense<0.000000e+00> : vector<8x384xf32>
    %45 = tpu.matmul %44, %42, %cst_41 {dimension_numbers = #tpu.dot_dimension_numbers<[1], [0], [0], [1], [0, 0, 1, 1], [], []>} : vector<8x4xbf16>, vector<4x384xbf16>, vector<8x384xf32> -> vector<8x384xf32>
    %46 = arith.addf %40, %45 : vector<8x384xf32>
    %c0_42 = arith.constant 0 : index
    %c0_43 = arith.constant 0 : index
    %c38 = arith.constant 38 : index
    %47 = vector.load %arg2[%c0_42, %c0_43, %c38] : memref<1x4x512xbf16, #tpu.memory_space<vmem>>, vector<1x4x384xbf16>
    %48 = vector.shape_cast %47 : vector<1x4x384xbf16> to vector<4x384xbf16>
    %c8 = arith.constant 8 : index
    %c0_44 = arith.constant 0 : index
    %c0_45 = arith.constant 0 : index
    %49 = vector.load %arg3[%c8, %c0_44, %c0_45] : memref<9x8x4xbf16, #tpu.memory_space<vmem>>, vector<1x8x4xbf16>
    %50 = vector.shape_cast %49 : vector<1x8x4xbf16> to vector<8x4xbf16>
    %cst_46 = arith.constant dense<0.000000e+00> : vector<8x384xf32>
    %51 = tpu.matmul %50, %48, %cst_46 {dimension_numbers = #tpu.dot_dimension_numbers<[1], [0], [0], [1], [0, 0, 1, 1], [], []>} : vector<8x4xbf16>, vector<4x384xbf16>, vector<8x384xf32> -> vector<8x384xf32>
    %52 = arith.addf %46, %51 : vector<8x384xf32>
    %c0_47 = arith.constant 0 : index
    %c0_48 = arith.constant 0 : index
    %53 = vector.load %arg4[%c0_47, %c0_48] : memref<8x1xf32, #tpu.memory_space<vmem>>, vector<8x1xf32>
    %54 = vector.broadcast %53 : vector<8x1xf32> to vector<8x384xf32>
    %55 = arith.addf %52, %54 : vector<8x384xf32>
    %c0_49 = arith.constant 0 : index
    %c0_50 = arith.constant 0 : index
    %56 = vector.load %arg5[%c0_49, %c0_50] : memref<1x384xf32, #tpu.memory_space<vmem>>, vector<1x384xf32>
    %57 = vector.broadcast %56 : vector<1x384xf32> to vector<8x384xf32>
    %58 = arith.mulf %55, %57 : vector<8x384xf32>
    %cst_51 = arith.constant dense<0.000000e+00> : vector<8xf32>
    %59 = vector.multi_reduction <add>, %58, %cst_51 [1] : vector<8x384xf32> to vector<8xf32>
    %60 = vector.shape_cast %59 : vector<8xf32> to vector<8x1xf32>
    %cst_52 = arith.constant 3.906250e-03 : f32
    %61 = vector.broadcast %cst_52 : f32 to vector<8x1xf32>
    %62 = arith.mulf %60, %61 : vector<8x1xf32>
    %63 = vector.broadcast %62 : vector<8x1xf32> to vector<8x384xf32>
    %64 = arith.subf %55, %63 : vector<8x384xf32>
    %65 = vector.broadcast %56 : vector<1x384xf32> to vector<8x384xf32>
    %66 = arith.mulf %64, %65 : vector<8x384xf32>
    %67 = arith.mulf %66, %66 : vector<8x384xf32>
    %cst_53 = arith.constant dense<0.000000e+00> : vector<8xf32>
    %68 = vector.multi_reduction <add>, %67, %cst_53 [1] : vector<8x384xf32> to vector<8xf32>
    %69 = vector.shape_cast %68 : vector<8xf32> to vector<8x1xf32>
    %cst_54 = arith.constant 3.906250e-03 : f32
    %70 = vector.broadcast %cst_54 : f32 to vector<8x1xf32>
    %71 = arith.mulf %69, %70 : vector<8x1xf32>
    %72 = vector.broadcast %62 : vector<8x1xf32> to vector<8x384xf32>
    %73 = arith.subf %55, %72 : vector<8x384xf32>
    %cst_55 = arith.constant 9.99999974E-6 : f32
    %74 = vector.broadcast %cst_55 : f32 to vector<8x1xf32>
    %75 = arith.addf %71, %74 : vector<8x1xf32>
    %76 = math.rsqrt %75 : vector<8x1xf32>
    %77 = vector.broadcast %76 : vector<8x1xf32> to vector<8x384xf32>
    %78 = arith.mulf %73, %77 : vector<8x384xf32>
    %cst_56 = arith.constant 0.000000e+00 : f32
    %79 = vector.broadcast %cst_56 : f32 to vector<8x384xf32>
    %80 = arith.maximumf %78, %79 : vector<8x384xf32>
    %c0_57 = arith.constant 0 : index
    %c0_58 = arith.constant 0 : index
    %c0_59 = arith.constant 0 : index
    %81 = vector.load %arg6[%c0_57, %c0_58, %c0_59] : memref<1x8x384xf32, #tpu.memory_space<vmem>>, vector<1x8x384xf32>
    %82 = vector.shape_cast %81 : vector<1x8x384xf32> to vector<8x384xf32>
    %83 = vector.shape_cast %80 : vector<8x384xf32> to vector<1x8x384xf32>
    tpu.vector_store %arg6[%c0_57, %c0_58, %c0_59], %83 {strides = array<i32>} : memref<1x8x384xf32, #tpu.memory_space<vmem>>, vector<1x8x384xf32>,
    return
  }
  func.func @transform_0(%arg0: i32, %arg1: i32) -> (i32, i32, i32) {
    %c0_i32 = arith.constant 0 : i32
    %c0_i32_0 = arith.constant 0 : i32
    %c0_i32_1 = arith.constant 0 : i32
    return %arg0, %c0_i32, %c0_i32_0 : i32, i32, i32
  }
  func.func @transform_1(%arg0: i32, %arg1: i32) -> (i32, i32, i32) {
    %c0_i32 = arith.constant 0 : i32
    %c0_i32_0 = arith.constant 0 : i32
    %c0_i32_1 = arith.constant 0 : i32
    return %c0_i32, %arg1, %c0_i32_0 : i32, i32, i32
  }
  func.func @transform_2(%arg0: i32, %arg1: i32) -> (i32, i32) {
    %c0_i32 = arith.constant 0 : i32
    %c0_i32_0 = arith.constant 0 : i32
    return %arg1, %c0_i32 : i32, i32
  }
  func.func @transform_3(%arg0: i32, %arg1: i32) -> (i32, i32) {
    %c0_i32 = arith.constant 0 : i32
    %c0_i32_0 = arith.constant 0 : i32
    %c0_i32_1 = arith.constant 0 : i32
    return %c0_i32, %c0_i32_0 : i32, i32
  }
  func.func @transform_4(%arg0: i32, %arg1: i32) -> (i32, i32, i32) {
    %c0_i32 = arith.constant 0 : i32
    %c0_i32_0 = arith.constant 0 : i32
    return %arg0, %arg1, %c0_i32 : i32, i32, i32
  }
}

</mosaic_0001>

<bundles_post_ra>
// kernel: tpu_custom_call.1
= control target key start
LH: loop header
LB: loop body
LE: loop exit
PB: predicated region body
PF: predicated region fallthrough
CT: control target
= control target key end

     0   :  { %9 = vsyncpa [#allocation3], 0  ;;  %s2114_s0 = inlined_call_operand.vmem [shape: bf16[2,4,512], index: 0, kind: input, shape index: {}]   ;;  %s2115_s1 = inlined_call_operand.vmem [shape: bf16[9,8,4], index: 1, kind: input, shape index: {}]   ;;  %s2116_s2 = inlined_call_operand.vmem [shape: f32[8,1], index: 2, kind: input, shape index: {}]   ;;  %s2117_s3 = inlined_call_operand.vmem [shape: f32[1,384], index: 3, kind: input, shape index: {}]   ;;  %s2118_s4 = inlined_call_operand.hbm [shape: f32[2,8,384], index: 4, kind: output, shape index: {}]  }
   0x1   :  { %11 = vsyncpa [#allocation3 + $0x1], 0  ;;  %s1874_s15 = smov 0   ;;  %s1876_s16 = smov 0  }
   0x2   :  { %s1878_s17 = smov 0   ;;  %s1880_s18 = smov 0  }
   0x3   :  { %s1882_s19 = smov 0   ;;  %s1884_s20 = smov 0  }
   0x4 LB: > { %s1564_s21 = sadd.s32 4294967295, %s1834_s20   ;;  %s1565_s22 = sadd.s32 4294967294, %s1834_s20   ;;  %s1834_s20 = sphi %s1884_s20, %s17_s20   ;;  %s1830_s19 = sphi %s1882_s19, %s2125_s19   ;;  %s1826_s18 = sphi %s1880_s18, %s2124_s18   ;;  %s1822_s17 = sphi %s1878_s17, %s2123_s17   ;;  %s1818_s16 = sphi %s1876_s16, %s2122_s16   ;;  %s1814_s15 = sphi %s1874_s15, %s2121_s15  }
   0x5   : > { %s29_s23 = sadd.s32 1, %s1830_s19  ;;  %s137_s24 = sadd.s32 1, %s1822_s17 }
   0x6   : > { %p31_p0 = scmp.ge.s32.totalorder %s29_s23, 2  ;;  %p147_p1 = scmp.ne.s32.totalorder %s1822_s17, %s1818_s16 }
   0x7   : > { %p148_p2 = scmp.eq.s32.totalorder %s1564_s21, 1  ;;  %p153_p3 = scmp.ne.s32.totalorder %s1818_s16, %s1814_s15 }
   0x8   : > { %s2127_s23 = smov (%p31_p0, %s29_s23), 0  ;;  %p154_p5 = scmp.eq.s32.totalorder %s1565_s22, 1 }
   0x9   : > { %p1914_p4 = por %p148_p2, %p147_p1  ;;  %s132_s26 = ssub.s32 %s1830_s19, %s2127_s23 }
   0xa   : > { %p1570_p6 = scmp.ge.s32.totalorder %s1834_s20, 1  ;;  %p135_p7 = scmp.eq.s32.totalorder %s132_s26, 0 }
   0xb   : > { %p1921_p8 = por %p154_p5, %p153_p3  ;;  %p197_p9 = scmp.lt.s32.totalorder %s1834_s20, 3 }
   0xc   : > { %s1927_s28 = scalar_select %p135_p7, %s1822_s17, %s137_s24  }
   0xd   : > { %p198_p10 = pnand %p1570_p6, %p197_p9 }
   0xe   : > { %p231_p11 = scmp.lt.s32.totalorder (!%p198_p10), %s1826_s18, 1  ;;  %s1840_s8 = smov (!%p198_p10), 127  }
   0xf   : > { %201 = sbr.rel (%p198_p10) target bundleno = 746 (0x2ea), region = 36  ;;  %s1841_s9 = smov (!%p198_p10), 126  }
  0x10   : > { %s1842_s10 = smov (!%p198_p10), 110   ;;  %s1843_s11 = smov (!%p198_p10), 109  }
  0x11   : > { %s1844_s12 = smov (!%p198_p10), 108   ;;  %s1845_s13 = smov (!%p198_p10), 92  }
  0x12   : > { %s1846_s14 = smov (!%p198_p10), 91   ;;  %s1847_s21 = smov (!%p198_p10), 90  }
  0x13   : > { %s228_s6 = sand.u32 (!%p198_p10), 1, %s1818_s16  }
  0x14   : > { %v255_v0 = vlaneseq  ;;  %v1836_v1 = vmov 1983009808   ;;  %s232_s29 = scalar_select %p231_p11, %s1826_s18, 1  ;;  %v1837_v5 = vmov 0.0   ;;  %v1838_v6 = vmov 0   ;;  %v1388_v18 = vld [vmem:[%s2116_s2] sm:$0xff] }
  0x15   : > { %v253_v2 = vunpack.c.l.s4 %v1836_v1  ;;  %1630 = vmatprep.subr.bf16.mxu1 %v1837_v5  ;;  %326 = vmatprep.mubr.bf16.mxu0 %v1838_v6  ;;  %vm1839_vm0 = vmmov 0   ;;  %vm276_vm1 = vcmask 1039360   ;;  %vm284_vm2 = vcmask 1041408   ;;  %v1573_v28 = vld [vmem:[%s2115_s1 + $0x4] sm:$0xf] }
  0x16   : > { %v1931_v3 = vshrl.u32 %v255_v0, 7  ;;  %s1611_s30 = sshll.u32 %s232_s29, 3  ;;  %1753 = vset.pattern.permute.xlu0 %v1838_v6  ;;  %1632 = vmatprep.mubr.msk.bf16.mxu1 %vm1839_vm0, %v1837_v5  ;;  %vm280_vm3 = vcmask 31744   ;;  %vm514_vm4 = vcmask 1031168   ;;  %v246_v39 = vld [vmem:[%s2115_s1] sm:$0xf] }
  0x17   : > { %v254_v4 = vunpack.c.0.s8 %v253_v2  ;;  %s235_s7 = scalar_lea.vmem %s2114_s0, %s1611_s30  ;;  %vm643_vm5 = vcmask 900096   ;;  %v1580_v49 = vld [vmem:[%s2115_s1 + $0x8] sm:$0xf]  ;;  %vm772_vm6 = vcmask 891904   ;;  %v1584_v59 = vld [vmem:[%s2115_s1 + $0xc] sm:$0xf] }
  0x18   : > { %v247_v8 = vld [vmem:[%s235_s7] sm:$0xff]  ;;  %vm901_vm7 = vcmask 883712   ;;  %vm1030_vm8 = vcmask 752640   ;;  %vm1159_vm9 = vcmask 744448   ;;  %vm1288_vm10 = vcmask 736256  }
  0x19   : > { %v257_v7 = vsub.s32 %v254_v4, %v1931_v3  ;;  %v245_v9 = vld [vmem:[%s235_s7] sm:$0x3f]  ;;  %v251_v11 = vcombine.high %v247_v8, %v247_v8  ;;  %s1684_s7 = smul.u32 24, %s228_s6 }
  0x1a   : > { %v376_v13 = vcombine.high %v245_v9, %v245_v9 }
  0x1b   : > { %v258_v10 = vrot.slane %v247_v8, %v257_v7  ;;  %v1942_v12 = vrot.slane %v245_v9, %v257_v7  ;;  %v265_v15 = vrot.slane %v251_v11, %v257_v7  ;;  %v1588_v8 = vld [vmem:[%s2115_s1 + $0x10] sm:$0xf] }
  0x1c   : > { %v1944_v16 = vrot.slane %v376_v13, %v257_v7 }
  0x1d   : > { %268 = vrot.lane.b32.xlu0 %v258_v10, %s1840_s8  ;;  %v266_v14 = vcombine.high %v258_v10, %v258_v10  ;;  %272 = vrot.lane.b32.xlu1 %v265_v15, %s1840_s8  ;;  %v267_v17 = vcombine.high %v265_v15, %v265_v15  ;;  %v391_v22 = vcombine.high %v1942_v12, %v1942_v12  ;;  %v396_v31 = vsel %vm284_vm2, %v1942_v12, 0 }
  0x1e   : > { %v402_v33 = vsel %vm284_vm2, %v1944_v16, 0 }
  0x21   : > { %270 = vrot.lane.b32.xlu0 %v266_v14, %s1840_s8  ;;  %274 = vrot.lane.b32.xlu1 %v267_v17, %s1840_s8  ;;  %s1685_s8 = smul.u32 384, %s1826_s18  ;;  %s1448_s18 = scalar_lea.sflag [#allocation3], %s228_s6 }
  0x25   : > { %506 = vrot.lane.b32.xlu0 %v258_v10, %s1841_s9  ;;  %508 = vrot.lane.b32.xlu1 %v266_v14, %s1841_s9 }
  0x29   : > { %510 = vrot.lane.b32.xlu0 %v265_v15, %s1841_s9  ;;  %512 = vrot.lane.b32.xlu1 %v267_v17, %s1841_s9  ;;  %s230_s9 = scalar_lea.vmem [#allocation2], %s1684_s7 }
  0x2d   : > { %635 = vrot.lane.b32.xlu0 %v258_v10, %s1842_s10  ;;  %637 = vrot.lane.b32.xlu1 %v266_v14, %s1842_s10 }
  0x31   : > { %639 = vrot.lane.b32.xlu0 %v265_v15, %s1842_s10  ;;  %641 = vrot.lane.b32.xlu1 %v267_v17, %s1842_s10  ;;  %s1464_s10 = sshll.u32 %s230_s9, 4  ;;  %s2070_s10 = int_to_ptr.vmem [resolvable:$true] %s1464_s10 }
  0x35   : > { %764 = vrot.lane.b32.xlu0 %v258_v10, %s1843_s11  ;;  %766 = vrot.lane.b32.xlu1 %v266_v14, %s1843_s11 }
  0x39   : > { %768 = vrot.lane.b32.xlu0 %v265_v15, %s1843_s11  ;;  %770 = vrot.lane.b32.xlu1 %v267_v17, %s1843_s11 }
  0x3d   : > { %893 = vrot.lane.b32.xlu0 %v258_v10, %s1844_s12  ;;  %895 = vrot.lane.b32.xlu1 %v266_v14, %s1844_s12 }
  0x41   : > { %897 = vrot.lane.b32.xlu0 %v265_v15, %s1844_s12  ;;  %899 = vrot.lane.b32.xlu1 %v267_v17, %s1844_s12 }
  0x45   : > { %1022 = vrot.lane.b32.xlu0 %v258_v10, %s1845_s13  ;;  %1024 = vrot.lane.b32.xlu1 %v266_v14, %s1845_s13 }
  0x49   : > { %1026 = vrot.lane.b32.xlu0 %v265_v15, %s1845_s13  ;;  %1028 = vrot.lane.b32.xlu1 %v267_v17, %s1845_s13  ;;  %s2068_s13 = scalar_lea.hbm %s2118_s4, %s1685_s8 }
  0x4d   : > { %1151 = vrot.lane.b32.xlu0 %v258_v10, %s1846_s14  ;;  %1153 = vrot.lane.b32.xlu1 %v266_v14, %s1846_s14 }
  0x51   : > { %1155 = vrot.lane.b32.xlu0 %v265_v15, %s1846_s14  ;;  %1157 = vrot.lane.b32.xlu1 %v267_v17, %s1846_s14  ;;  %s1758_s14 = scalar_lea.vmem %s2070_s10, 384 }
  0x52   : > { %p1759_p12 = scmp.ne.s32.totalorder %s2070_s10, %s1758_s14 }
  0x54   : > { %p1760_p13 = pnand %p1759_p12, %p1914_p4 }
  0x55   : > { %1280 = vrot.lane.b32.xlu0 %v258_v10, %s1847_s21  ;;  %1282 = vrot.lane.b32.xlu1 %v266_v14, %s1847_s21 }
  0x56   : > { %p1761_p0 = pneg %p1760_p13 }
  0x59   : > { %1284 = vrot.lane.b32.xlu0 %v265_v15, %s1847_s21  ;;  %1286 = vrot.lane.b32.xlu1 %v267_v17, %s1847_s21  ;;  %s1848_s21 = smov [#allocation2]  }
  0x5a   : > { %s1762_s22 = sshll.u32 %s1848_s21, 4  ;;  %s1763_s22 = int_to_ptr.vmem [resolvable:$false] %s1762_s22 }
  0x5b   : > { %s1764_s24 = scalar_lea.vmem %s1763_s22, 768  ;;  %p1765_p1 = scmp.lt.s32.totalorder %s2070_s10, %s1763_s22 }
  0x5c   : > { %p1766_p2 = scmp.lt.s32.totalorder %s1764_s24, %s1758_s14 }
  0x5d   : > { %1391 = vperm.xlu0 %1753, %v1388_v18   ;;  %v1592_v18 = vld [vmem:[%s2115_s1 + $0x14] sm:$0xf] }
  0x5e   : > { %p1767_p3 = por %p1766_p2, %p1765_p1 }
  0x60   : > { %p1768_p5 = pnand %p1767_p3, %p1761_p0 }
  0x8f   : > { %v269_v19 = vpop.permute.xlu0 %268  ;;  %v273_v20 = vpop.permute.xlu1 %272 }
  0x93   : > { %v271_v21 = vpop.permute.xlu0 %270  ;;  %v275_v25 = vpop.permute.xlu1 %274 }
  0x94   : > { %v278_v23 = vsel %vm276_vm1, %v271_v21, %v273_v20  ;;  %v277_v24 = vsel %vm276_vm1, %v269_v19, %v271_v21  ;;  %v279_v27 = vsel %vm276_vm1, %v273_v20, %v275_v25 }
  0x95   : > { %1574 = vmatprep.subr.msk.bf16.mxu0 %vm284_vm2, %v278_v23  ;;  %v286_v26 = vsel %vm284_vm2, %v277_v24, 0  ;;  %v292_v29 = vsel %vm284_vm2, %v279_v27, 0 }
  0x96   : > { %309 = vmatpush1.bf16.msra.mxu0 %v286_v26  ;;  %1631 = vmatpush3.bf16.msra.mxu1 %v292_v29 }
  0x97   : > { %1577 = vmatprep.subr.msk.bf16.mxu0 %vm284_vm2, %v391_v22  ;;  %v507_v30 = vpop.permute.xlu0 %506  ;;  %v509_v32 = vpop.permute.xlu1 %508  ;;  %1636 = vmatprep.subr.bf16.mxu1 %v1837_v5 }
  0x98   : > { %v515_v35 = vsel %vm514_vm4, %v507_v30, %v509_v32 }
  0x99   : > { %1575 = vmatmul.mubr.msk.bf16.vlgmr.msra.gmra.mxu0 %vm280_vm3, %v1573_v28  ;;  %1633 = vmatmul.mubr.msk.bf16.vlgmr.msra.gmra.mxu1 %vm280_vm3, %v1573_v28  ;;  %v522_v40 = vsel %vm284_vm2, %v515_v35, 0  ;;  %v1596_v28 = vld [vmem:[%s2115_s1 + $0x18] sm:$0xf] }
  0x9a   : > { %419 = vmatpush1.bf16.msra.mxu0 %v396_v31  ;;  %436 = vmatprep.mubr.bf16.mxu0 %v1838_v6 }
  0x9b   : > { %v511_v34 = vpop.permute.xlu0 %510  ;;  %1637 = vmatpush3.bf16.msra.mxu1 %v402_v33  ;;  %1638 = vmatprep.mubr.msk.bf16.mxu1 %vm1839_vm0, %v1837_v5  ;;  %v513_v37 = vpop.permute.xlu1 %512 }
  0x9c   : > { %v516_v36 = vsel %vm514_vm4, %v509_v32, %v511_v34  ;;  %1642 = vmatprep.subr.bf16.mxu1 %v1837_v5  ;;  %v517_v38 = vsel %vm514_vm4, %v511_v34, %v513_v37 }
  0x9d   : > { %1581 = vmatprep.subr.msk.bf16.mxu0 %vm284_vm2, %v516_v36  ;;  %v528_v42 = vsel %vm284_vm2, %v517_v38, 0  ;;  %v1600_v38 = vld [vmem:[%s2115_s1 + $0x1c] sm:$0xf] }
  0x9f   : > { %v636_v41 = vpop.permute.xlu0 %635  ;;  %v638_v43 = vpop.permute.xlu1 %637 }
  0xa0   : > { %v644_v45 = vsel %vm643_vm5, %v636_v41, %v638_v43  ;;  %v1604_v41 = vld [vmem:[%s2115_s1 + $0x20] sm:$0xf] }
  0xa1   : > { %1578 = vmatmul.mubr.msk.bf16.vlgmr.msra.gmra.mxu0 %vm280_vm3, %v246_v39  ;;  %1639 = vmatmul.mubr.msk.bf16.vlgmr.msra.gmra.mxu1 %vm280_vm3, %v246_v39  ;;  %v651_v50 = vsel %vm284_vm2, %v644_v45, 0 }
  0xa2   : > { %545 = vmatpush1.bf16.msra.mxu0 %v522_v40  ;;  %562 = vmatprep.mubr.bf16.mxu0 %v1838_v6 }
  0xa3   : > { %v640_v44 = vpop.permute.xlu0 %639  ;;  %1643 = vmatpush3.bf16.msra.mxu1 %v528_v42  ;;  %1644 = vmatprep.mubr.msk.bf16.mxu1 %vm1839_vm0, %v1837_v5  ;;  %v642_v47 = vpop.permute.xlu1 %641 }
  0xa4   : > { %v645_v46 = vsel %vm643_vm5, %v638_v43, %v640_v44  ;;  %1648 = vmatprep.subr.bf16.mxu1 %v1837_v5  ;;  %v646_v48 = vsel %vm643_vm5, %v640_v44, %v642_v47 }
  0xa5   : > { %1585 = vmatprep.subr.msk.bf16.mxu0 %vm284_vm2, %v645_v46  ;;  %v657_v52 = vsel %vm284_vm2, %v646_v48, 0 }
  0xa7   : > { %v765_v51 = vpop.permute.xlu0 %764  ;;  %v767_v53 = vpop.permute.xlu1 %766 }
  0xa8   : > { %v773_v55 = vsel %vm772_vm6, %v765_v51, %v767_v53 }
  0xa9   : > { %1582 = vmatmul.mubr.msk.bf16.vlgmr.msra.gmra.mxu0 %vm280_vm3, %v1580_v49  ;;  %1645 = vmatmul.mubr.msk.bf16.vlgmr.msra.gmra.mxu1 %vm280_vm3, %v1580_v49  ;;  %v780_v60 = vsel %vm284_vm2, %v773_v55, 0 }
  0xaa   : > { %674 = vmatpush1.bf16.msra.mxu0 %v651_v50  ;;  %691 = vmatprep.mubr.bf16.mxu0 %v1838_v6 }
  0xab   : > { %v769_v54 = vpop.permute.xlu0 %768  ;;  %1649 = vmatpush3.bf16.msra.mxu1 %v657_v52  ;;  %1650 = vmatprep.mubr.msk.bf16.mxu1 %vm1839_vm0, %v1837_v5  ;;  %v771_v57 = vpop.permute.xlu1 %770 }
  0xac   : > { %v774_v56 = vsel %vm772_vm6, %v767_v53, %v769_v54  ;;  %1654 = vmatprep.subr.bf16.mxu1 %v1837_v5  ;;  %v775_v58 = vsel %vm772_vm6, %v769_v54, %v771_v57 }
  0xad   : > { %1589 = vmatprep.subr.msk.bf16.mxu0 %vm284_vm2, %v774_v56  ;;  %v786_v62 = vsel %vm284_vm2, %v775_v58, 0 }
  0xaf   : > { %v894_v61 = vpop.permute.xlu0 %893  ;;  %v896_v63 = vpop.permute.xlu1 %895 }
  0xb0   : > { %v902_v1 = vsel %vm901_vm7, %v894_v61, %v896_v63 }
  0xb1   : > { %1586 = vmatmul.mubr.msk.bf16.vlgmr.msra.gmra.mxu0 %vm280_vm3, %v1584_v59  ;;  %1651 = vmatmul.mubr.msk.bf16.vlgmr.msra.gmra.mxu1 %vm280_vm3, %v1584_v59  ;;  %v909_v9 = vsel %vm284_vm2, %v902_v1, 0 }
  0xb2   : > { %803 = vmatpush1.bf16.msra.mxu0 %v780_v60  ;;  %820 = vmatprep.mubr.bf16.mxu0 %v1838_v6 }
  0xb3   : > { %v898_v0 = vpop.permute.xlu0 %897  ;;  %1655 = vmatpush3.bf16.msra.mxu1 %v786_v62  ;;  %1656 = vmatprep.mubr.msk.bf16.mxu1 %vm1839_vm0, %v1837_v5  ;;  %v900_v4 = vpop.permute.xlu1 %899 }
  0xb4   : > { %v903_v2 = vsel %vm901_vm7, %v896_v63, %v898_v0  ;;  %1660 = vmatprep.subr.bf16.mxu1 %v1837_v5  ;;  %v904_v7 = vsel %vm901_vm7, %v898_v0, %v900_v4 }
  0xb5   : > { %1593 = vmatprep.subr.msk.bf16.mxu0 %vm284_vm2, %v903_v2  ;;  %v915_v11 = vsel %vm284_vm2, %v904_v7, 0 }
  0xb7   : > { %v1023_v10 = vpop.permute.xlu0 %1022  ;;  %v1025_v12 = vpop.permute.xlu1 %1024 }
  0xb8   : > { %v1031_v14 = vsel %vm1030_vm8, %v1023_v10, %v1025_v12 }
  0xb9   : > { %1590 = vmatmul.mubr.msk.bf16.vlgmr.msra.gmra.mxu0 %vm280_vm3, %v1588_v8  ;;  %1657 = vmatmul.mubr.msk.bf16.vlgmr.msra.gmra.mxu1 %vm280_vm3, %v1588_v8  ;;  %v1038_v19 = vsel %vm284_vm2, %v1031_v14, 0 }
  0xba   : > { %932 = vmatpush1.bf16.msra.mxu0 %v909_v9  ;;  %949 = vmatprep.mubr.bf16.mxu0 %v1838_v6 }
  0xbb   : > { %v1027_v13 = vpop.permute.xlu0 %1026  ;;  %1661 = vmatpush3.bf16.msra.mxu1 %v915_v11  ;;  %1662 = vmatprep.mubr.msk.bf16.mxu1 %vm1839_vm0, %v1837_v5  ;;  %v1029_v16 = vpop.permute.xlu1 %1028 }
  0xbc   : > { %v1032_v15 = vsel %vm1030_vm8, %v1025_v12, %v1027_v13  ;;  %1666 = vmatprep.subr.bf16.mxu1 %v1837_v5  ;;  %v1033_v17 = vsel %vm1030_vm8, %v1027_v13, %v1029_v16 }
  0xbd   : > { %1597 = vmatprep.subr.msk.bf16.mxu0 %vm284_vm2, %v1032_v15  ;;  %v1044_v21 = vsel %vm284_vm2, %v1033_v17, 0 }
  0xbf   : > { %v1152_v20 = vpop.permute.xlu0 %1151  ;;  %v1154_v22 = vpop.permute.xlu1 %1153 }
  0xc0   : > { %v1160_v24 = vsel %vm1159_vm9, %v1152_v20, %v1154_v22 }
  0xc1   : > { %1594 = vmatmul.mubr.msk.bf16.vlgmr.msra.gmra.mxu0 %vm280_vm3, %v1592_v18  ;;  %1663 = vmatmul.mubr.msk.bf16.vlgmr.msra.gmra.mxu1 %vm280_vm3, %v1592_v18  ;;  %v1167_v29 = vsel %vm284_vm2, %v1160_v24, 0 }
  0xc2   : > { %1061 = vmatpush1.bf16.msra.mxu0 %v1038_v19  ;;  %1078 = vmatprep.mubr.bf16.mxu0 %v1838_v6 }
  0xc3   : > { %v1156_v23 = vpop.permute.xlu0 %1155  ;;  %1667 = vmatpush3.bf16.msra.mxu1 %v1044_v21  ;;  %1668 = vmatprep.mubr.msk.bf16.mxu1 %vm1839_vm0, %v1837_v5  ;;  %v1158_v26 = vpop.permute.xlu1 %1157 }
  0xc4   : > { %v1161_v25 = vsel %vm1159_vm9, %v1154_v22, %v1156_v23  ;;  %1672 = vmatprep.subr.bf16.mxu1 %v1837_v5  ;;  %v1162_v27 = vsel %vm1159_vm9, %v1156_v23, %v1158_v26 }
  0xc5   : > { %1601 = vmatprep.subr.msk.bf16.mxu0 %vm284_vm2, %v1161_v25  ;;  %v1173_v31 = vsel %vm284_vm2, %v1162_v27, 0 }
  0xc7   : > { %v1281_v30 = vpop.permute.xlu0 %1280  ;;  %v1283_v32 = vpop.permute.xlu1 %1282 }
  0xc8   : > { %v1289_v34 = vsel %vm1288_vm10, %v1281_v30, %v1283_v32 }
  0xc9   : > { %1598 = vmatmul.mubr.msk.bf16.vlgmr.msra.gmra.mxu0 %vm280_vm3, %v1596_v28  ;;  %1669 = vmatmul.mubr.msk.bf16.vlgmr.msra.gmra.mxu1 %vm280_vm3, %v1596_v28  ;;  %v1296_v39 = vsel %vm284_vm2, %v1289_v34, 0 }
  0xca   : > { %1190 = vmatpush1.bf16.msra.mxu0 %v1167_v29  ;;  %1207 = vmatprep.mubr.bf16.mxu0 %v1838_v6 }
  0xcb   : > { %v1285_v33 = vpop.permute.xlu0 %1284  ;;  %1673 = vmatpush3.bf16.msra.mxu1 %v1173_v31  ;;  %1674 = vmatprep.mubr.msk.bf16.mxu1 %vm1839_vm0, %v1837_v5  ;;  %v1287_v36 = vpop.permute.xlu1 %1286 }
  0xcc   : > { %v1290_v35 = vsel %vm1288_vm10, %v1283_v32, %v1285_v33  ;;  %1678 = vmatprep.subr.bf16.mxu1 %v1837_v5  ;;  %v1291_v37 = vsel %vm1288_vm10, %v1285_v33, %v1287_v36 }
  0xcd   : > { %1605 = vmatprep.subr.msk.bf16.mxu0 %vm284_vm2, %v1290_v35  ;;  %v1302_v40 = vsel %vm284_vm2, %v1291_v37, 0 }
  0xd1   : > { %1602 = vmatmul.mubr.msk.bf16.vlgmr.msra.gmra.mxu0 %vm280_vm3, %v1600_v38  ;;  %1675 = vmatmul.mubr.msk.bf16.vlgmr.msra.gmra.mxu1 %vm280_vm3, %v1600_v38 }
  0xd2   : > { %1319 = vmatpush1.bf16.msra.mxu0 %v1296_v39  ;;  %1336 = vmatprep.mubr.bf16.mxu0 %v1838_v6 }
  0xd3   : > { %1679 = vmatpush3.bf16.msra.mxu1 %v1302_v40  ;;  %1680 = vmatprep.mubr.msk.bf16.mxu1 %vm1839_vm0, %v1837_v5 }
  0xd9   : > { %1606 = vmatmul.mubr.msk.bf16.vlgmr.msra.gmra.mxu0 %vm280_vm3, %v1604_v41  ;;  %1681 = vmatmul.mubr.msk.bf16.vlgmr.msra.gmra.mxu1 %vm280_vm3, %v1604_v41 }
 0x159   : > { %v328_v42 = vpop.f32.mrf.mxu0  ;;  %v369_v44 = vpop.f32.mrf.mxu1 }
 0x15b   : > { %v330_v43 = vpop.f32.mrf.mxu0  ;;  %v1634_v46 = vpop.f32.mrf.mxu1 }
 0x15d   : > { %v332_v45 = vpop.f32.mrf.mxu0  ;;  %v372_v47 = vpop.f32.mrf.mxu1 }
 0x15f   : > { %v333_v6 = vpop.f32.mrf.mxu0  ;;  %v1635_v48 = vpop.f32.mrf.mxu1 }
 0x161   : > { %v438_v49 = vpop.f32.mrf.mxu0  ;;  %v479_v51 = vpop.f32.mrf.mxu1 }
 0x162   : > { %v439_v30 = vadd.f32 %v438_v49, %v328_v42  ;;  %v480_v34 = vadd.f32 %v479_v51, %v369_v44 }
 0x163   : > { %v440_v50 = vpop.f32.mrf.mxu0  ;;  %v1640_v52 = vpop.f32.mrf.mxu1 }
 0x164   : > { %v441_v33 = vadd.f32 %v440_v50, %v330_v43 }
 0x165   : > { %v442_v5 = vpop.f32.mrf.mxu0  ;;  %v482_v54 = vpop.f32.mrf.mxu1 }
 0x167   : > { %v443_v53 = vpop.f32.mrf.mxu0  ;;  %v1641_v55 = vpop.f32.mrf.mxu1 }
 0x169   : > { %v564_v56 = vpop.f32.mrf.mxu0  ;;  %v605_v58 = vpop.f32.mrf.mxu1 }
 0x16a   : > { %v611_v35 = vadd.f32 %v564_v56, %v439_v30  ;;  %v613_v39 = vadd.f32 %v605_v58, %v480_v34  ;;  %v1401_v56 = vsub.s32 0, %v1931_v3 }
 0x16b   : > { %v566_v57 = vpop.f32.mrf.mxu0  ;;  %v1646_v60 = vpop.f32.mrf.mxu1 }
 0x16c   : > { %v612_v38 = vadd.f32 %v566_v57, %v441_v33  ;;  %v1392_v60 = vpop.permute.xlu0 %1391 }
 0x16d   : > { %v568_v59 = vpop.f32.mrf.mxu0  ;;  %v608_v62 = vpop.f32.mrf.mxu1 }
 0x16e   : > { %v1405_v62 = vsub.s32 1, %v1931_v3 }
 0x16f   : > { %v569_v61 = vpop.f32.mrf.mxu0  ;;  %v1647_v63 = vpop.f32.mrf.mxu1 }
 0x170   : > { %v1397_v61 = vld [vmem:[%s2117_s3] sm:$0x7] }
 0x171   : > { %v693_v0 = vpop.f32.mrf.mxu0  ;;  %v734_v2 = vpop.f32.mrf.mxu1 }
 0x172   : > { %v740_v40 = vadd.f32 %v693_v0, %v611_v35  ;;  %v742_v6 = vadd.f32 %v734_v2, %v613_v39 }
 0x173   : > { %v695_v1 = vpop.f32.mrf.mxu0  ;;  %v1652_v7 = vpop.f32.mrf.mxu1 }
 0x174   : > { %v741_v46 = vadd.f32 %v695_v1, %v612_v38  ;;  %v1409_v7 = vsub.s32 2, %v1931_v3 }
 0x175   : > { %v697_v4 = vpop.f32.mrf.mxu0  ;;  %v737_v9 = vpop.f32.mrf.mxu1 }
 0x177   : > { %v698_v8 = vpop.f32.mrf.mxu0  ;;  %v1653_v10 = vpop.f32.mrf.mxu1 }
 0x178   : > { %v1402_v10 = vrot.slane %v1397_v61, %v1401_v56 }
 0x179   : > { %v822_v11 = vpop.f32.mrf.mxu0  ;;  %v863_v13 = vpop.f32.mrf.mxu1 }
 0x17a   : > { %v869_v47 = vadd.f32 %v822_v11, %v740_v40  ;;  %v871_v53 = vadd.f32 %v863_v13, %v742_v6  ;;  %v1406_v13 = vrot.slane %v1397_v61, %v1405_v62 }
 0x17b   : > { %v824_v12 = vpop.f32.mrf.mxu0  ;;  %v1658_v15 = vpop.f32.mrf.mxu1 }
 0x17c   : > { %v870_v52 = vadd.f32 %v824_v12, %v741_v46 }
 0x17d   : > { %v826_v14 = vpop.f32.mrf.mxu0  ;;  %v866_v17 = vpop.f32.mrf.mxu1 }
 0x17f   : > { %v827_v16 = vpop.f32.mrf.mxu0  ;;  %v1659_v18 = vpop.f32.mrf.mxu1 }
 0x181   : > { %v951_v19 = vpop.f32.mrf.mxu0  ;;  %v992_v21 = vpop.f32.mrf.mxu1 }
 0x182   : > { %v998_v42 = vadd.f32 %v951_v19, %v869_v47  ;;  %v1000_v44 = vadd.f32 %v992_v21, %v871_v53  ;;  %v1410_v19 = vrot.slane %v1397_v61, %v1409_v7 }
 0x183   : > { %v953_v20 = vpop.f32.mrf.mxu0  ;;  %v1664_v23 = vpop.f32.mrf.mxu1 }
 0x184   : > { %v999_v43 = vadd.f32 %v953_v20, %v870_v52 }
 0x185   : > { %v955_v22 = vpop.f32.mrf.mxu0  ;;  %v995_v25 = vpop.f32.mrf.mxu1 }
 0x187   : > { %v956_v24 = vpop.f32.mrf.mxu0  ;;  %v1665_v26 = vpop.f32.mrf.mxu1 }
 0x189   : > { %v1080_v27 = vpop.f32.mrf.mxu0  ;;  %v1121_v29 = vpop.f32.mrf.mxu1 }
 0x18a   : > { %v1127_v50 = vadd.f32 %v1080_v27, %v998_v42  ;;  %v1129_v58 = vadd.f32 %v1121_v29, %v1000_v44 }
 0x18b   : > { %v1082_v28 = vpop.f32.mrf.mxu0  ;;  %v1670_v32 = vpop.f32.mrf.mxu1 }
 0x18c   : > { %v1128_v57 = vadd.f32 %v1082_v28, %v999_v43 }
 0x18d   : > { %v1084_v31 = vpop.f32.mrf.mxu0  ;;  %v1124_v37 = vpop.f32.mrf.mxu1 }
 0x18f   : > { %v1085_v36 = vpop.f32.mrf.mxu0  ;;  %v1671_v41 = vpop.f32.mrf.mxu1 }
 0x191   : > { %v1209_v45 = vpop.f32.mrf.mxu0  ;;  %v1250_v5 = vpop.f32.mrf.mxu1 }
 0x192   : > { %v1256_v59 = vadd.f32 %v1209_v45, %v1127_v50  ;;  %v1258_v2 = vadd.f32 %v1250_v5, %v1129_v58 }
 0x193   : > { %v1211_v48 = vpop.f32.mrf.mxu0  ;;  %v1676_v54 = vpop.f32.mrf.mxu1 }
 0x194   : > { %v1257_v1 = vadd.f32 %v1211_v48, %v1128_v57 }
 0x195   : > { %v1213_v49 = vpop.f32.mrf.mxu0  ;;  %v1253_v55 = vpop.f32.mrf.mxu1 }
 0x197   : > { %v1214_v51 = vpop.f32.mrf.mxu0  ;;  %v1677_v63 = vpop.f32.mrf.mxu1 }
 0x199   : > { %v1338_v0 = vpop.f32.mrf.mxu0  ;;  %v1379_v9 = vpop.f32.mrf.mxu1 }
 0x19a   : > { %v1385_v4 = vadd.f32 %v1338_v0, %v1256_v59  ;;  %v1387_v14 = vadd.f32 %v1379_v9, %v1258_v2 }
 0x19b   : > { %v1340_v8 = vpop.f32.mrf.mxu0  ;;  %v1682_v16 = vpop.f32.mrf.mxu1 }
 0x19c   : > { %v1394_v11 = vadd.f32 %v1392_v60, %v1385_v4  ;;  %v1386_v12 = vadd.f32 %v1340_v8, %v1257_v1  ;;  %v1396_v18 = vadd.f32 %v1392_v60, %v1387_v14 }
 0x19d   : > { %v1342_v15 = vpop.f32.mrf.mxu0  ;;  %v1382_v21 = vpop.f32.mrf.mxu1 }
 0x19e   : > { %v1395_v17 = vadd.f32 %v1392_v60, %v1386_v12  ;;  %v1414_v23 = vmul.f32 %v1402_v10, %v1394_v11  ;;  %v1416_v25 = vmul.f32 %v1410_v19, %v1396_v18 }
 0x19f   : > { %v1343_v20 = vpop.f32.mrf.mxu0  ;;  %v1683_v24 = vpop.f32.mrf.mxu1 }
 0x1a0   : > { %v1415_v22 = vmul.f32 %v1406_v13, %v1395_v17 }
 0x1a2   : > { %v1417_v26 = vadd.f32 %v1415_v22, %v1414_v23 }
 0x1a4   : > { %v1418_v3 = vadd.f32 %v1417_v26, %v1416_v25 }
 0x1a6   : > { %1419 = vadd.xlane.f32.xlu1 %v1418_v3 }
 0x22f   : > { %v1420_v27 = vpop.xlane.xlu1 %1419 }
 0x230   : > { %v1421_v28 = vmul.f32 0.00390625, %v1420_v27 }
 0x232   : > { %v1422_v29 = vsub.f32 %v1394_v11, %v1421_v28  ;;  %v1423_v30 = vsub.f32 %v1395_v17, %v1421_v28  ;;  %v1424_v31 = vsub.f32 %v1396_v18, %v1421_v28 }
 0x234   : > { %v1425_v32 = vmul.f32 %v1422_v29, %v1402_v10  ;;  %v1426_v33 = vmul.f32 %v1423_v30, %v1406_v13  ;;  %v1427_v34 = vmul.f32 %v1424_v31, %v1410_v19 }
 0x236   : > { %v1428_v35 = vmul.f32 %v1425_v32, %v1425_v32  ;;  %v1429_v36 = vmul.f32 %v1426_v33, %v1426_v33  ;;  %v1430_v37 = vmul.f32 %v1427_v34, %v1427_v34 }
 0x238   : > { %v1431_v38 = vadd.f32 %v1429_v36, %v1428_v35 }
 0x23a   : > { %v1432_v39 = vadd.f32 %v1431_v38, %v1430_v37 }
 0x23c   : > { %1433 = vadd.xlane.f32.xlu0 %v1432_v39 }
 0x2c5   : > { %v1434_v40 = vpop.xlane.xlu0 %1433 }
 0x2c6   : > { %v1435_v41 = vmul.f32 0.00390625, %v1434_v40 }
 0x2c8   : > { %v1436_v45 = vadd.f32 1e-05, %v1435_v41 }
 0x2ca   : > { %1756 = vrsqrt.f32 %v1436_v45 }
 0x2d7   : > { %v1757_v46 = vpop.eup %1756 }
 0x2d8   : > { %v1438_v6 = vmul.f32 %v1757_v46, %v1422_v29  ;;  %v1439_v47 = vmul.f32 %v1757_v46, %v1423_v30  ;;  %v1440_v48 = vmul.f32 %v1757_v46, %v1424_v31 }
 0x2da   : > { %v1441_v5 = vmax.f32 %v1438_v6, 0.0  ;;  %v1442_v52 = vmax.f32 %v1439_v47, 0.0  ;;  %v1443_v53 = vmax.f32 %v1440_v48, 0.0 }
 0x2dc   : > { %1444 = vst [vmem:[%s230_s9] sm:$0xff] %v1441_v5  ;;  %1445 = vst [vmem:[%s230_s9 + $0x8] sm:$0xff] %v1442_v52 }
 0x2dd   : > { %1446 = vst [vmem:[%s230_s9 + $0x10] sm:$0xff] %v1443_v53 }
 0x2de   : > { %1771 = shalt.err (!%p1768_p5)
}
 0x2df   : > { %s1772_s26 = scalar_lea.hbm %s2068_s13, 384  ;;  %s1776_s5 = scalar_lea.hbm %s2118_s4, 768 }
 0x2e0   : > { %p1773_p6 = scmp.ne.s32.totalorder %s2068_s13, %s1772_s26  ;;  %p1777_p10 = scmp.lt.s32.totalorder %s2068_s13, %s2118_s4 }
 0x2e1   : > { %p1778_p11 = scmp.lt.s32.totalorder %s1776_s5, %s1772_s26 }
 0x2e2   : > { %p1774_p7 = pnand %p1773_p6, %p1914_p4 }
 0x2e3   : > { %p1779_p12 = por %p1778_p11, %p1777_p10 }
 0x2e4   : > { %p1775_p9 = pneg %p1774_p7 }
 0x2e6   : > { %p1780_p13 = pnand %p1779_p12, %p1775_p9 }
 0x2e8   : > { %1783 = shalt.err (!%p1780_p13)
}
 0x2e9   : > { %1686 = dma.vmem_to_hbm [thread:$0]  (%p1914_p4), %s2070_s10, 384, %s2068_s13, %s1448_s18  }
 0x2ea PF: > { %p1692_p0 = scmp.ge.s32.totalorder %s1834_s20, 2  ;;  %s1476_s8 = sand.u32 1, %s1814_s15  }
 0x2eb   : > { %s1477_s9 = scalar_lea.sflag [#allocation3], %s1476_s8 }
 0x2ec   : > { %p1689_p1 = pnand %p1692_p0, %p1921_p8 }
 0x2ee   : > { %p1690_p2 = pneg %p1689_p1 }
 0x2f0   : > { %1809 = dma.done.wait (%p1690_p2), %s1477_s9, 384  }
 0x2f1   : > { %1811 = vsyncadd (%p1690_p2), %s1477_s9, 4294966912  ;;  %s17_s20 = sadd.s32 1, %s1834_s20   ;;  %s2121_s15 = smov %s1818_s16 }
 0x2f2   : > { %p14_p3 = scmp.ge.s32.totalorder %s17_s20, 4   ;;  %s2122_s16 = smov %s1822_s17 }
 0x2f3   : > { %s2123_s17 = smov %s1927_s28  ;;  %s2124_s18 = smov %s1830_s19 }
 0x2f4   : > { %s2125_s19 = smov %s2127_s23  ;;  %16 = sbr.rel (!%p14_p3) target bundleno = 4 (0x4), region = 85 }
 0x2f9   :  { %1482 = vsyncpa [#allocation3], 1 }
 0x2fa   :  { %1484 = vsyncpa [#allocation3 + $0x1], 1 }

</bundles_post_ra>
